<compile_context>
chip_gen: v6e
topology: v6e:2x2x1
jax: 0.10.0
libtpu: 0.0.40
codegen_flags: <defaults>
</compile_context>

<pallas_src>
import functools

import jax
import jax.numpy as jnp
from jax import lax
from jax.experimental import pallas as pl
from jax.experimental.pallas import tpu as pltpu


_MXU_MIN_SRC_ROWS = 64   # use the one-hot MXU gather only when (1+S) >= this


def _revert_kernel(idx_ref, data_ref, mask_ref, out_ref, *, num_src, use_mxu):
    """Revert-gather for a block of NB batch rows (single whole-tile load/store).

    idx_ref : VMEM int32 [NB, L]       revert indices (values in [0, L))
    data_ref: VMEM       [NB, 1+S, D]  row 0 = global token, rows 1.. = kept tokens
    mask_ref: VMEM       [1, D]        learned mask token (cast to data dtype)
    out_ref : VMEM       [NB, 1+L, D]

    out[b, 0]     = data[b, 0]
    out[b, 1 + l] = data[b, 1 + idx[b, l]]   if idx[b, l] <  S
                  = mask_token               if idx[b, l] >= S

    NOTE (ragged last grid block): rows past N hold OOB padding.  Those idx
    values only feed compares (they never address memory) and the padded
    output rows are dropped on writeback, so the garbage is harmless.  Do NOT
    replace this compare-based gather with an idx-addressed DMA gather without
    first masking the padded rows.
    """
    idx = idx_ref[...]                                   # (NB, L) int32
    nb, l = idx.shape
    data = data_ref[...]                                 # (NB, 1+S, D) whole-tile read
    d = data.shape[-1]
    sp1 = num_src                                        # 1 + S

    # Extended indices over all (1+S) source rows: output row 0 always takes
    # source row 0 (global token); output row 1+l takes source row 1+idx[l].
    idx_ext = jnp.concatenate(
        [jnp.zeros((nb, 1), jnp.int32), idx + jnp.int32(1)], axis=1)   # (NB, 1+L)

    mask_row = mask_ref[...][None, :, :]                 # (1, 1, D), hoisted

    if use_mxu:
        # Large S: one-hot gather on the MXU.  Exact (single nonzero per row,
        # f32 accumulation); one-hot built in the data dtype so bf16
        # activations stay on the fast MXU path.
        col = lax.broadcasted_iota(jnp.int32, (nb, 1 + l, sp1), 2)
        onehot = (col == idx_ext[:, :, None]).astype(data.dtype)        # (NB,1+L,1+S)
        gathered = jnp.einsum('bls,bsd->bld', onehot, data,
                              preferred_element_type=jnp.float32)       # (NB,1+L,D)
        use_mask = (idx_ext >= sp1)[:, :, None]
        gathered = jnp.where(use_mask, mask_row.astype(jnp.float32), gathered)
        out_ref[...] = gathered.astype(out_ref.dtype)
    else:
        # Small S (the common case here): VPU select chain over source rows.
        # No one-hot, no f32 blowup; indices >= 1+S (appended mask slots)
        # match no source row and keep the mask-token init.
        acc = jnp.broadcast_to(mask_row, (nb, 1 + l, d)).astype(data.dtype)
        sel = idx_ext[:, :, None]                        # (NB, 1+L, 1)
        for s in range(sp1):                             # static unroll, sp1 < 64
            acc = jnp.where(sel == jnp.int32(s), data[:, s, :][:, None, :], acc)
        out_ref[...] = acc.astype(out_ref.dtype)         # one whole-tile store


def _pick_rows_per_block(n, bytes_per_row, *, max_block_bytes, min_grid_steps=2):
    """Rows per grid step.

    Either the full batch (n <= 8: full extent is always a legal block dim) or
    a multiple of 8 (sublane-aligned) that (a) fits the VMEM byte budget and
    (b) exposes at least `min_grid_steps` grid steps so the "parallel" batch
    axis actually shards across v7x's two TensorCores.
    """
    if n <= 8:
        return n
    max_rows = max(8, (max_block_bytes // max(bytes_per_row, 1)) // 8 * 8)
    target = ((-(-n // min_grid_steps)) + 7) // 8 * 8     # round8(cdiv(n, steps))
    nb = min(max_rows, target)
    return n if nb >= n else nb


def revert_gather(data, revert_idx, mask_token, *, max_block_bytes=4 << 20):
    """data: [N, 1+S, D], revert_idx: [N, L] int, mask_token: [1, D].

    Returns [N, 1+L, D] = cat(global_token, gather(cat(valid, mask_tokens), revert_idx)).
    """
    N, Sp1, D = data.shape
    L = revert_idx.shape[-1]
    use_mxu = Sp1 >= _MXU_MIN_SRC_ROWS

    it = jnp.dtype(data.dtype).itemsize
    acc_it = 4 if use_mxu else it
    # Per-batch-row VMEM: double-buffered idx/data/out blocks + in-kernel
    # intermediates (select accumulator or f32 gather result, idx_ext, one-hot).
    bytes_per_row = 2 * (L * 4 + Sp1 * D * it + (1 + L) * D * it)
    bytes_per_row += (1 + L) * D * acc_it + (1 + L) * 8
    if use_mxu:
        bytes_per_row += (1 + L) * Sp1 * it

    NB = _pick_rows_per_block(N, bytes_per_row, max_block_bytes=max_block_bytes)
    grid = (pl.cdiv(N, NB),)   # ragged last block: padded reads, masked writeback

    # TODO(synk): if production d_model stays < 128, interleave 128/D batch rows
    # into the lane axis (lane-dense blocks) to avoid masked vst.msk stores.
    kernel = functools.partial(_revert_kernel, num_src=Sp1, use_mxu=use_mxu)

    return pl.pallas_call(
        kernel,
        grid=grid,
        in_specs=[
            pl.BlockSpec((NB, L), lambda b: (b, 0)),
            pl.BlockSpec((NB, Sp1, D), lambda b: (b, 0, 0)),
            pl.BlockSpec((1, D), lambda b: (0, 0)),
        ],
        out_specs=pl.BlockSpec((NB, 1 + L, D), lambda b: (b, 0, 0)),
        out_shape=jax.ShapeDtypeStruct((N, 1 + L, D), data.dtype),
        compiler_params=pltpu.CompilerParams(
            dimension_semantics=("parallel",),
            vmem_limit_bytes=32 << 20),
    )(revert_idx.astype(jnp.int32), data, mask_token.astype(data.dtype))


class Revert:
    """JAX/Pallas port of the PyTorch `Revert` module (forward pass)."""

    def __init__(self, d_model, temporal_cols, img_cols, nlp_cols, key):
        # torch.nn.Parameter(torch.rand(1, d_model)) -> deterministic uniform init
        self.mask_token = jax.random.uniform(key, (1, d_model), dtype=jnp.float32)
        self.temporal_cols = temporal_cols
        self.img_cols = img_cols
        self.nlp_cols = nlp_cols

    def __call__(self, temporal_block_encoding, img_encoding_dict, nlp_encoding_dict,
                 idx_dict, padding_mask_dict):
        result_dict = {}

        # ---- TemporalRevert: gather along the modality axis, per (batch, time) ----
        B, T, Mp1, D = temporal_block_encoding.shape
        t_revert_idx = idx_dict['temporal_block_revert_idx']        # [B, T, Mfull]
        Mfull = t_revert_idx.shape[-1]
        data2d = temporal_block_encoding.reshape(B * T, Mp1, D)
        idx2d = t_revert_idx.reshape(B * T, Mfull)
        revert_seq = revert_gather(data2d, idx2d, self.mask_token)  # [B*T, 1+Mfull, D]
        revert_seq = revert_seq.reshape(B, T, 1 + Mfull, D)
        assert len(self.temporal_cols) == revert_seq.shape[-2], \
            f'{len(self.temporal_cols)}, {revert_seq.shape}'
        for n, col in enumerate(self.temporal_cols):
            result_dict[col] = revert_seq[:, :, n, :]

        # ---- NonTemporalRevert for each image / nlp column ----
        # TODO(synk): pad modalities to a common (S, L) and fuse into a single
        # pallas_call to amortize per-launch dispatch/pipeline overhead.
        for key, val in {**img_encoding_dict, **nlp_encoding_dict}.items():
            ridx = idx_dict[f'{key}_revert_idx']
            result_dict[key] = revert_gather(val, ridx, self.mask_token)

        return result_dict


# ------------------------- pure-JAX reference (for checking) -------------------------
def ref_non_temporal(data, revert_idx, mask_token):
    g = data[:, :1, :]
    v = data[:, 1:, :]
    B, S, D = v.shape
    L = revert_idx.shape[-1]
    mt = jnp.broadcast_to(mask_token[None, :, :], (B, L - S, D))
    v = jnp.concatenate([v, mt], axis=1)
    idx = jnp.broadcast_to(revert_idx[..., None], (B, L, D))
    gathered = jnp.take_along_axis(v, idx, axis=1)
    return jnp.concatenate([g, gathered], axis=1)


if __name__ == "__main__":
    key = jax.random.PRNGKey(0)
    keys = jax.random.split(key, 10)

    D = 32                      # d_model
    B, T = 2, 8                 # batch, temporal seq len
    M_KEPT, M_FULL = 2, 3       # kept / full modality count
    temporal_cols = ['t0', 't1', 't2', 't3']     # == 1 + M_FULL
    img_cols = ['img']
    nlp_cols = ['nlp']
    IMG_S, IMG_L = 6, 16        # kept / full image patch tokens
    NLP_S, NLP_L = 4, 8         # kept / full nlp tokens

    model = Revert(D, temporal_cols, img_cols, nlp_cols, keys[0])

    temporal_block_encoding = jax.random.normal(keys[1], (B, T, 1 + M_KEPT, D), jnp.float32)
    img_encoding = {'img': jax.random.normal(keys[2], (B, 1 + IMG_S, D), jnp.float32)}
    nlp_encoding = {'nlp': jax.random.normal(keys[3], (B, 1 + NLP_S, D), jnp.float32)}

    def make_perm(k, rows, n):
        ks = jax.random.split(k, rows)
        return jnp.stack([jax.random.permutation(ki, n) for ki in ks]).astype(jnp.int32)

    idx_dict = {
        'temporal_block_revert_idx': make_perm(keys[4], B * T, M_FULL).reshape(B, T, M_FULL),
        'img_revert_idx': make_perm(keys[5], B, IMG_L),
        'nlp_revert_idx': make_perm(keys[6], B, NLP_L),
    }
    padding_mask_dict = {}  # unused by the forward pass

    out = model(temporal_block_encoding, img_encoding, nlp_encoding, idx_dict, padding_mask_dict)
    out = jax.tree_util.tree_map(jax.block_until_ready, out)

    # ---- correctness check against pure-JAX reference ----
    t2d = temporal_block_encoding.reshape(B * T, 1 + M_KEPT, D)
    ti2d = idx_dict['temporal_block_revert_idx'].reshape(B * T, M_FULL)
    ref_seq = ref_non_temporal(t2d, ti2d, model.mask_token).reshape(B, T, 1 + M_FULL, D)
    for n, col in enumerate(temporal_cols):
        assert jnp.allclose(out[col], ref_seq[:, :, n, :]), col
    ref_img = ref_non_temporal(img_encoding['img'], idx_dict['img_revert_idx'], model.mask_token)
    ref_nlp = ref_non_temporal(nlp_encoding['nlp'], idx_dict['nlp_revert_idx'], model.mask_token)
    assert out['img'].shape == (B, 1 + IMG_L, D) and jnp.allclose(out['img'], ref_img)
    assert out['nlp'].shape == (B, 1 + NLP_L, D) and jnp.allclose(out['nlp'], ref_nlp)

    print("KERNEL_OK")
</pallas_src>

<mosaic_0001>
module attributes {stable_mosaic.version = 11 : i64} {
  func.func @_revert_kernel(%arg0: i32, %arg1: memref<8x3xi32, #tpu.memory_space<vmem>>, %arg2: memref<8x3x32xf32, #tpu.memory_space<vmem>>, %arg3: memref<1x32xf32, #tpu.memory_space<vmem>>, %arg4: memref<8x4x32xf32, #tpu.memory_space<vmem>>) attributes {dimension_semantics = [#tpu.dimension_semantics<parallel>], iteration_bounds = array<i64: 2>, scalar_prefetch = 0 : i64, scratch_operands = 0 : i64, tpu.core_type = #tpu.core_type<tc>, window_params = [{transform_indices = @transform_0, window_bounds = array<i64: 8, 3>}, {transform_indices = @transform_1, window_bounds = array<i64: 8, 3, 32>}, {pipeline_mode = #tpu.pipeline_mode<synchronous>, transform_indices = @transform_2, window_bounds = array<i64: 1, 32>}, {transform_indices = @transform_3, window_bounds = array<i64: 8, 4, 32>}]} {
    %c0 = arith.constant 0 : index
    %c0_0 = arith.constant 0 : index
    %0 = vector.load %arg1[%c0, %c0_0] : memref<8x3xi32, #tpu.memory_space<vmem>>, vector<8x3xi32>
    %c0_1 = arith.constant 0 : index
    %c0_2 = arith.constant 0 : index
    %c0_3 = arith.constant 0 : index
    %1 = vector.load %arg2[%c0_1, %c0_2, %c0_3] : memref<8x3x32xf32, #tpu.memory_space<vmem>>, vector<8x3x32xf32>
    %c0_i32 = arith.constant 0 : i32
    %2 = vector.broadcast %c0_i32 : i32 to vector<8x1xi32>
    %c1_i32 = arith.constant 1 : i32
    %3 = vector.broadcast %c1_i32 : i32 to vector<8x3xi32>
    %4 = arith.addi %0, %3 : vector<8x3xi32>
    %5 = tpu.concatenate %2, %4 in 1 : vector<8x1xi32>, vector<8x3xi32> -> vector<8x4xi32>
    %c0_4 = arith.constant 0 : index
    %c0_5 = arith.constant 0 : index
    %6 = vector.load %arg3[%c0_4, %c0_5] : memref<1x32xf32, #tpu.memory_space<vmem>>, vector<1x32xf32>
    %7 = vector.shape_cast %6 : vector<1x32xf32> to vector<1x1x32xf32>
    %8 = vector.shape_cast %7 : vector<1x1x32xf32> to vector<1x1x32xf32>
    %9 = vector.broadcast %8 : vector<1x1x32xf32> to vector<8x4x32xf32>
    %10 = vector.shape_cast %5 : vector<8x4xi32> to vector<8x4x1xi32>
    %c0_i32_6 = arith.constant 0 : i32
    %11 = vector.broadcast %c0_i32_6 : i32 to vector<8x4x1xi32>
    %12 = arith.cmpi eq, %10, %11 : vector<8x4x1xi32>
    %13 = vector.extract_strided_slice %1 {offsets = [0, 0, 0], sizes = [8, 1, 32], strides = [1, 1, 1]} : vector<8x3x32xf32> to vector<8x1x32xf32>
    %14 = vector.shape_cast %13 : vector<8x1x32xf32> to vector<8x32xf32>
    %15 = vector.shape_cast %14 : vector<8x32xf32> to vector<8x1x32xf32>
    %16 = vector.shape_cast %12 : vector<8x4x1xi1> to vector<8x4x1xi1>
    %17 = vector.broadcast %16 : vector<8x4x1xi1> to vector<8x4x32xi1>
    %18 = vector.shape_cast %15 : vector<8x1x32xf32> to vector<8x1x32xf32>
    %19 = vector.broadcast %18 : vector<8x1x32xf32> to vector<8x4x32xf32>
    %20 = arith.select %17, %19, %9 : vector<8x4x32xi1>, vector<8x4x32xf32>
    %c1_i32_7 = arith.constant 1 : i32
    %21 = vector.broadcast %c1_i32_7 : i32 to vector<8x4x1xi32>
    %22 = arith.cmpi eq, %10, %21 : vector<8x4x1xi32>
    %23 = vector.extract_strided_slice %1 {offsets = [0, 1, 0], sizes = [8, 1, 32], strides = [1, 1, 1]} : vector<8x3x32xf32> to vector<8x1x32xf32>
    %24 = vector.shape_cast %23 : vector<8x1x32xf32> to vector<8x32xf32>
    %25 = vector.shape_cast %24 : vector<8x32xf32> to vector<8x1x32xf32>
    %26 = vector.shape_cast %22 : vector<8x4x1xi1> to vector<8x4x1xi1>
    %27 = vector.broadcast %26 : vector<8x4x1xi1> to vector<8x4x32xi1>
    %28 = vector.shape_cast %25 : vector<8x1x32xf32> to vector<8x1x32xf32>
    %29 = vector.broadcast %28 : vector<8x1x32xf32> to vector<8x4x32xf32>
    %30 = arith.select %27, %29, %20 : vector<8x4x32xi1>, vector<8x4x32xf32>
    %c2_i32 = arith.constant 2 : i32
    %31 = vector.broadcast %c2_i32 : i32 to vector<8x4x1xi32>
    %32 = arith.cmpi eq, %10, %31 : vector<8x4x1xi32>
    %33 = vector.extract_strided_slice %1 {offsets = [0, 2, 0], sizes = [8, 1, 32], strides = [1, 1, 1]} : vector<8x3x32xf32> to vector<8x1x32xf32>
    %34 = vector.shape_cast %33 : vector<8x1x32xf32> to vector<8x32xf32>
    %35 = vector.shape_cast %34 : vector<8x32xf32> to vector<8x1x32xf32>
    %36 = vector.shape_cast %32 : vector<8x4x1xi1> to vector<8x4x1xi1>
    %37 = vector.broadcast %36 : vector<8x4x1xi1> to vector<8x4x32xi1>
    %38 = vector.shape_cast %35 : vector<8x1x32xf32> to vector<8x1x32xf32>
    %39 = vector.broadcast %38 : vector<8x1x32xf32> to vector<8x4x32xf32>
    %40 = arith.select %37, %39, %30 : vector<8x4x32xi1>, vector<8x4x32xf32>
    %c0_8 = arith.constant 0 : index
    %c0_9 = arith.constant 0 : index
    %c0_10 = arith.constant 0 : index
    %41 = vector.load %arg4[%c0_8, %c0_9, %c0_10] : memref<8x4x32xf32, #tpu.memory_space<vmem>>, vector<8x4x32xf32>
    tpu.vector_store %arg4[%c0_8, %c0_9, %c0_10], %40 {strides = array<i32>} : memref<8x4x32xf32, #tpu.memory_space<vmem>>, vector<8x4x32xf32>,
    return
  }
  func.func @transform_0(%arg0: i32) -> (i32, i32) {
    %c0_i32 = arith.constant 0 : i32
    %c0_i32_0 = arith.constant 0 : i32
    return %arg0, %c0_i32 : i32, i32
  }
  func.func @transform_1(%arg0: i32) -> (i32, i32, i32) {
    %c0_i32 = arith.constant 0 : i32
    %c0_i32_0 = arith.constant 0 : i32
    %c0_i32_1 = arith.constant 0 : i32
    return %arg0, %c0_i32, %c0_i32_0 : i32, i32, i32
  }
  func.func @transform_2(%arg0: i32) -> (i32, i32) {
    %c0_i32 = arith.constant 0 : i32
    %c0_i32_0 = arith.constant 0 : i32
    %c0_i32_1 = arith.constant 0 : i32
    return %c0_i32, %c0_i32_0 : i32, i32
  }
  func.func @transform_3(%arg0: i32) -> (i32, i32, i32) {
    %c0_i32 = arith.constant 0 : i32
    %c0_i32_0 = arith.constant 0 : i32
    %c0_i32_1 = arith.constant 0 : i32
    return %arg0, %c0_i32, %c0_i32_0 : i32, i32, i32
  }
}

</mosaic_0001>

<bundles_post_ra>
// kernel: tpu_custom_call.1
= control target key start
LH: loop header
LB: loop body
LE: loop exit
PB: predicated region body
PF: predicated region fallthrough
CT: control target
= control target key end

     0   :  { %8 = vsyncpa [#allocation3], 0  ;;  %s888_s0 = inlined_call_operand.vmem [shape: s32[16,3], index: 0, kind: input, shape index: {}]   ;;  %s889_s1 = inlined_call_operand.vmem [shape: f32[16,3,32], index: 1, kind: input, shape index: {}]   ;;  %s890_s2 = inlined_call_operand.vmem [shape: f32[1,32], index: 2, kind: input, shape index: {}]   ;;  %s891_s3 = inlined_call_operand.hbm [shape: f32[16,4,32], index: 3, kind: output, shape index: {}]  }
   0x1   :  { %10 = vsyncpa [#allocation3 + $0x1], 0  ;;  %s698_s12 = smov 0   ;;  %s700_s13 = smov 0  }
   0x2   :  { %s702_s14 = smov 0   ;;  %s704_s15 = smov 0  }
   0x3 LB: > { %s719_s16 = sadd.s32 4294967295, %s672_s15   ;;  %s555_s17 = sadd.s32 4294967294, %s672_s15   ;;  %s672_s15 = sphi %s704_s15, %s897_s15   ;;  %s668_s14 = sphi %s702_s14, %s896_s14   ;;  %s664_s13 = sphi %s700_s13, %s895_s13   ;;  %s660_s12 = sphi %s698_s12, %s894_s12  }
   0x4   : > { %s723_s18 = sadd.s32 1, %s672_s15   ;;  %s96_s19 = sadd.s32 1, %s668_s14 }
   0x5   : > { %s93_s20 = ssub.s32 %s672_s15, %s723_s18  ;;  %p106_p0 = scmp.ne.s32.totalorder %s668_s14, %s664_s13 }
   0x6   : > { %p94_p1 = scmp.eq.s32.totalorder %s93_s20, 0  ;;  %p107_p2 = scmp.eq.s32.totalorder %s719_s16, 1 }
   0x7   : > { %p112_p3 = scmp.ne.s32.totalorder %s664_s13, %s660_s12  ;;  %p113_p4 = scmp.eq.s32.totalorder %s555_s17, 1 }
   0x8   : > { %s734_s21 = scalar_select %p94_p1, %s668_s14, %s96_s19  }
   0x9   : > { %p736_p5 = por %p107_p2, %p106_p0  ;;  %p740_p6 = por %p113_p4, %p112_p3 }
   0xa   : > { %p558_p7 = scmp.ge.s32.totalorder %s672_s15, 1  ;;  %p150_p8 = scmp.lt.s32.totalorder %s672_s15, 3 }
   0xc   : > { %p151_p9 = pnand %p558_p7, %p150_p8 }
   0xd   : > { %p178_p10 = scmp.lt.s32.totalorder (!%p151_p9), %s719_s16, 1  ;;  %s674_s29 = smov (!%p151_p9), 1  }
   0xe   : > { %154 = sbr.rel (%p151_p9) target bundleno = 290 (0x122), region = 32  ;;  %s561_s30 = sshll.u32 (!%p151_p9), %s719_s16, 3 }
   0xf   : > { %p183_p11 = scmp.lt.s32.totalorder (!%p151_p9), %s561_s30, 15  ;;  %s175_s8 = sand.u32 (!%p151_p9), 1, %s664_s13  }
  0x10   : > { %s559_s11 = sshll.u32 (!%p151_p9), %s175_s8, 5  ;;  %s569_s19 = sshll.u32 (!%p151_p9), %s719_s16, 9 }
  0x11   : > { %s803_s17 = scalar_lea.vmem (!%p151_p9), [#allocation2], %s559_s11  ;;  %s848_s26 = scalar_lea.sflag (!%p151_p9), [#allocation3], %s175_s8 }
  0x12   : > { %s481_s20 = sshll.u32 (!%p151_p9), %s803_s17, 4  ;;  %s840_s20 = int_to_ptr.vmem [resolvable:$true] %s481_s20 }
  0x13   : > { %s179_s24 = scalar_select %p178_p10, %s719_s16, 1  ;;  %v210_v2 = vlaneseq  ;;  %vm201_vm0 = vcmask 7168   ;;  %vm458_vm1 = vcmask 257024   ;;  %v781_v31 = vld [vmem:[%s890_s2] ss:$0 sm:$0xff] }
  0x14   : > { %s899_s30 = smov (!%p183_p11, %s561_s30), 15  ;;  %s612_s27 = scalar_lea.vmem %s840_s20, 512 }
  0x15   : > { %s560_s25 = sshll.u32 %s179_s24, 3  ;;  %v211_v3 = vshrl.u32 %v210_v2, 7  ;;  %s562_s4 = sshll.u32 %s899_s30, 2 }
  0x16   : > { %s181_s28 = scalar_lea.vmem %s888_s0, %s560_s25  ;;  %s764_s7 = scalar_lea.vmem %s889_s1, %s562_s4 }
  0x17   : > { %v189_v0 = vld [vmem:[%s181_s28] sm:$0xff]  ;;  %v751_v4 = vsub.s32 1, %v211_v3  ;;  %v753_v5 = vsub.s32 0, %v211_v3  ;;  %v757_v10 = vsub.s32 2, %v211_v3  ;;  %v233_v11 = vsub.s32 3, %v211_v3  ;;  %s838_s25 = scalar_lea.hbm %s891_s3, %s569_s19  ;;  %p613_p12 = scmp.ne.s32.totalorder %s840_s20, %s612_s27 }
  0x18   : > { %v198_v1 = vadd.s32 1, %v189_v0  ;;  %v240_v14 = vsub.s32 4, %v211_v3  ;;  %v247_v15 = vsub.s32 5, %v211_v3  ;;  %v254_v18 = vsub.s32 6, %v211_v3  ;;  %v191_v22 = vld [vmem:[%s764_s7 + $0x4] sm:$0x7] }
  0x19   : > { %v261_v19 = vsub.s32 7, %v211_v3  ;;  %v190_v23 = vld [vmem:[%s764_s7] sm:$0x7]  ;;  %v192_v24 = vld [vmem:[%s764_s7 + $0x8] sm:$0x7]  ;;  %v297_v26 = vrot.slane %v191_v22, %v753_v5  ;;  %v361_v27 = vrot.slane %v191_v22, %v751_v4  ;;  %v425_v28 = vrot.slane %v191_v22, %v757_v10  ;;  %p614_p13 = pnand %p613_p12, %p736_p5  ;;  %s675_s28 = smov [#allocation2]  }
  0x1a   : > { %199 = vrot.lane.b32.xlu0 %v198_v1, %s674_s29  ;;  %v193_v25 = vld [vmem:[%s764_s7 + $0xc] sm:$0x7]  ;;  %v293_v29 = vrot.slane %v190_v23, %v753_v5  ;;  %v776_v30 = vld [vmem:[%s764_s7 + $0x10] sm:$0x7]  ;;  %v357_v32 = vrot.slane %v190_v23, %v751_v4  ;;  %v421_v33 = vrot.slane %v190_v23, %v757_v10  ;;  %v301_v34 = vrot.slane %v192_v24, %v753_v5  ;;  %v195_v43 = vld [vmem:[%s764_s7 + $0x14] sm:$0x7] }
  0x1b   : > { %v365_v35 = vrot.slane %v192_v24, %v751_v4  ;;  %v429_v38 = vrot.slane %v192_v24, %v757_v10  ;;  %v305_v39 = vrot.slane %v193_v25, %v753_v5  ;;  %v369_v40 = vrot.slane %v193_v25, %v751_v4  ;;  %v196_v56 = vld [vmem:[%s764_s7 + $0x18] sm:$0x7]  ;;  %v197_v60 = vld [vmem:[%s764_s7 + $0x1c] sm:$0x7]  ;;  %p615_p0 = pneg %p614_p13  ;;  %s616_s29 = sshll.u32 %s675_s28, 4  ;;  %s617_s29 = int_to_ptr.vmem [resolvable:$false] %s616_s29 }
  0x1c   : > { %v433_v41 = vrot.slane %v193_v25, %v757_v10  ;;  %v309_v42 = vrot.slane %v776_v30, %v753_v5  ;;  %v373_v46 = vrot.slane %v776_v30, %v751_v4  ;;  %v437_v53 = vrot.slane %v776_v30, %v757_v10  ;;  %s618_s30 = scalar_lea.vmem %s617_s29, 1024  ;;  %p619_p1 = scmp.lt.s32.totalorder %s840_s20, %s617_s29 }
  0x1d   : > { %v313_v54 = vrot.slane %v195_v43, %v753_v5  ;;  %v377_v55 = vrot.slane %v195_v43, %v751_v4  ;;  %v441_v59 = vrot.slane %v195_v43, %v757_v10  ;;  %v317_v3 = vrot.slane %v196_v56, %v753_v5  ;;  %p620_p2 = scmp.lt.s32.totalorder %s618_s30, %s612_s27 }
  0x1f   : > { %p621_p3 = por %p620_p2, %p619_p1 }
  0x21   : > { %p622_p4 = pnand %p621_p3, %p615_p0 }
  0x8c   : > { %v200_v6 = vpop.permute.xlu0 %199 }
  0x8d   : > { %v202_v7 = vsel %vm201_vm0, 0, %v200_v6  ;;  %v381_v6 = vrot.slane %v196_v56, %v751_v4 }
  0x8e   : > { %v220_v8 = vrot.slane %v202_v7, %v751_v4  ;;  %v213_v9 = vrot.slane %v202_v7, %v753_v5  ;;  %v227_v12 = vrot.slane %v202_v7, %v757_v10  ;;  %v234_v13 = vrot.slane %v202_v7, %v233_v11 }
  0x8f   : > { %v241_v16 = vrot.slane %v202_v7, %v240_v14  ;;  %v248_v17 = vrot.slane %v202_v7, %v247_v15  ;;  %v255_v20 = vrot.slane %v202_v7, %v254_v18  ;;  %v262_v21 = vrot.slane %v202_v7, %v261_v19 }
  0x90   : > { %222 = vbcast.lane.b32.xlu1 %v220_v8, 256  ;;  %215 = vbcast.lane.b32.xlu0 %v213_v9, 256  ;;  %v321_v7 = vrot.slane %v197_v60, %v753_v5  ;;  %v385_v11 = vrot.slane %v197_v60, %v751_v4 }
  0x94   : > { %229 = vbcast.lane.b32.xlu1 %v227_v12, 256  ;;  %236 = vbcast.lane.b32.xlu0 %v234_v13, 256 }
  0x98   : > { %243 = vbcast.lane.b32.xlu1 %v241_v16, 256  ;;  %250 = vbcast.lane.b32.xlu0 %v248_v17, 256  ;;  %v445_v16 = vrot.slane %v196_v56, %v757_v10  ;;  %v449_v17 = vrot.slane %v197_v60, %v757_v10 }
  0x9c   : > { %257 = vbcast.lane.b32.xlu1 %v255_v20, 256  ;;  %264 = vbcast.lane.b32.xlu0 %v262_v21, 256 }
 0x102   : > { %v223_v36 = vpop.permute.xlu1 %222  ;;  %v216_v37 = vpop.permute.xlu0 %215 }
 0x103   : > { %vm267_vm2 = vcmp.eq.s32.totalorder %v223_v36, 0  ;;  %vm331_vm3 = vcmp.eq.s32.totalorder %v223_v36, 1  ;;  %vm266_vm4 = vcmp.eq.s32.totalorder %v216_v37, 0  ;;  %vm330_vm5 = vcmp.eq.s32.totalorder %v216_v37, 1 }
 0x104   : > { %v323_v44 = vsel %vm267_vm2, %v297_v26, %v781_v31  ;;  %v322_v45 = vsel %vm266_vm4, %v293_v29, %v781_v31  ;;  %vm395_vm6 = vcmp.eq.s32.totalorder %v223_v36, 2  ;;  %vm394_vm7 = vcmp.eq.s32.totalorder %v216_v37, 2 }
 0x105   : > { %v387_v47 = vsel %vm331_vm3, %v361_v27, %v323_v44  ;;  %v386_v48 = vsel %vm330_vm5, %v357_v32, %v322_v45 }
 0x106   : > { %v451_v49 = vsel %vm395_vm6, %v425_v28, %v387_v47  ;;  %v450_v50 = vsel %vm394_vm7, %v421_v33, %v386_v48  ;;  %v230_v51 = vpop.permute.xlu1 %229  ;;  %v237_v52 = vpop.permute.xlu0 %236 }
 0x107   : > { %460 = vst.msk [vmem:[%s803_s17 + $0x4] sm:$0xf] %vm458_vm1, %v451_v49  ;;  %459 = vst.msk [vmem:[%s803_s17] sm:$0xf] %vm458_vm1, %v450_v50  ;;  %vm268_vm8 = vcmp.eq.s32.totalorder %v230_v51, 0  ;;  %vm332_vm9 = vcmp.eq.s32.totalorder %v230_v51, 1 }
 0x108   : > { %vm269_vm10 = vcmp.eq.s32.totalorder %v237_v52, 0  ;;  %v324_v57 = vsel %vm268_vm8, %v301_v34, %v781_v31  ;;  %vm333_vm11 = vcmp.eq.s32.totalorder %v237_v52, 1  ;;  %vm396_vm12 = vcmp.eq.s32.totalorder %v230_v51, 2 }
 0x109   : > { %v325_v58 = vsel %vm269_vm10, %v305_v39, %v781_v31  ;;  %v388_v61 = vsel %vm332_vm9, %v365_v35, %v324_v57  ;;  %vm397_vm13 = vcmp.eq.s32.totalorder %v237_v52, 2 }
 0x10a   : > { %v389_v62 = vsel %vm333_vm11, %v369_v40, %v325_v58  ;;  %v452_v63 = vsel %vm396_vm12, %v429_v38, %v388_v61  ;;  %v244_v1 = vpop.permute.xlu1 %243  ;;  %v251_v2 = vpop.permute.xlu0 %250 }
 0x10b   : > { %v453_v0 = vsel %vm397_vm13, %v433_v41, %v389_v62  ;;  %461 = vst.msk [vmem:[%s803_s17 + $0x8] sm:$0xf] %vm458_vm1, %v452_v63  ;;  %vm270_vm14 = vcmp.eq.s32.totalorder %v244_v1, 0  ;;  %vm334_vm15 = vcmp.eq.s32.totalorder %v244_v1, 1  ;;  %vm271_vm0 = vcmp.eq.s32.totalorder %v251_v2, 0 }
 0x10c   : > { %462 = vst.msk [vmem:[%s803_s17 + $0xc] sm:$0xf] %vm458_vm1, %v453_v0  ;;  %v326_v8 = vsel %vm270_vm14, %v309_v42, %v781_v31  ;;  %v327_v9 = vsel %vm271_vm0, %v313_v54, %v781_v31  ;;  %vm335_vm2 = vcmp.eq.s32.totalorder %v251_v2, 1  ;;  %vm398_vm3 = vcmp.eq.s32.totalorder %v244_v1, 2 }
 0x10d   : > { %v390_v12 = vsel %vm334_vm15, %v373_v46, %v326_v8  ;;  %v391_v13 = vsel %vm335_vm2, %v377_v55, %v327_v9  ;;  %vm399_vm4 = vcmp.eq.s32.totalorder %v251_v2, 2 }
 0x10e   : > { %v454_v14 = vsel %vm398_vm3, %v437_v53, %v390_v12  ;;  %v455_v15 = vsel %vm399_vm4, %v441_v59, %v391_v13  ;;  %v258_v5 = vpop.permute.xlu1 %257  ;;  %v265_v18 = vpop.permute.xlu0 %264 }
 0x10f   : > { %463 = vst.msk [vmem:[%s803_s17 + $0x10] sm:$0xf] %vm458_vm1, %v454_v14  ;;  %464 = vst.msk [vmem:[%s803_s17 + $0x14] sm:$0xf] %vm458_vm1, %v455_v15  ;;  %vm272_vm5 = vcmp.eq.s32.totalorder %v258_v5, 0  ;;  %vm336_vm6 = vcmp.eq.s32.totalorder %v258_v5, 1 }
 0x110   : > { %vm273_vm7 = vcmp.eq.s32.totalorder %v265_v18, 0  ;;  %v328_v4 = vsel %vm272_vm5, %v317_v3, %v781_v31  ;;  %vm337_vm8 = vcmp.eq.s32.totalorder %v265_v18, 1  ;;  %vm400_vm9 = vcmp.eq.s32.totalorder %v258_v5, 2 }
 0x111   : > { %v329_v19 = vsel %vm273_vm7, %v321_v7, %v781_v31  ;;  %v392_v10 = vsel %vm336_vm6, %v381_v6, %v328_v4  ;;  %vm401_vm10 = vcmp.eq.s32.totalorder %v265_v18, 2 }
 0x112   : > { %v393_v20 = vsel %vm337_vm8, %v385_v11, %v329_v19  ;;  %v456_v21 = vsel %vm400_vm9, %v445_v16, %v392_v10 }
 0x113   : > { %v457_v22 = vsel %vm401_vm10, %v449_v17, %v393_v20  ;;  %465 = vst.msk [vmem:[%s803_s17 + $0x18] sm:$0xf] %vm458_vm1, %v456_v21 }
 0x114   : > { %466 = vst.msk [vmem:[%s803_s17 + $0x1c] sm:$0xf] %vm458_vm1, %v457_v22 }
 0x115   : > { %625 = shalt.err (!%p622_p4)
}
 0x116   : > { %s626_s4 = scalar_lea.hbm %s838_s25, 512  ;;  %s630_s7 = scalar_lea.hbm %s891_s3, 1024 }
 0x117   : > { %p627_p7 = scmp.ne.s32.totalorder %s838_s25, %s626_s4  ;;  %p631_p10 = scmp.lt.s32.totalorder %s838_s25, %s891_s3 }
 0x118   : > { %p632_p11 = scmp.lt.s32.totalorder %s630_s7, %s626_s4 }
 0x119   : > { %p628_p8 = pnand %p627_p7, %p736_p5 }
 0x11a   : > { %p633_p12 = por %p632_p11, %p631_p10 }
 0x11b   : > { %p629_p9 = pneg %p628_p8 }
 0x11d   : > { %p634_p13 = pnand %p633_p12, %p629_p9 }
 0x11f   : > { %637 = shalt.err (!%p634_p13)
}
 0x120   : > { %s676_s10 = smov 64   ;;  %s677_s11 = smov 4  }
 0x121   : > { %570 = dma.vmem_to_hbm [thread:$0]  (%p736_p5), %s840_s20, 512, %s838_s25, %s848_s26, %s676_s10, %s676_s10, %s677_s11  }
 0x122 PF: > { %p576_p0 = scmp.ge.s32.totalorder %s672_s15, 2  ;;  %s496_s17 = sand.u32 1, %s660_s12  }
 0x123   : > { %s497_s19 = scalar_lea.sflag [#allocation3], %s496_s17 }
 0x124   : > { %p573_p1 = pnand %p576_p0, %p740_p6 }
 0x126   : > { %p574_p2 = pneg %p573_p1 }
 0x128   : > { %655 = dma.done.wait (%p574_p2), %s497_s19, 512  }
 0x129   : > { %657 = vsyncadd (%p574_p2), %s497_s19, 4294966784  ;;  %p13_p3 = scmp.ge.s32.totalorder %s723_s18, 4   ;;  %s894_s12 = smov %s664_s13 }
 0x12a   : > { %s895_s13 = smov %s668_s14  ;;  %s896_s14 = smov %s734_s21 }
 0x12b   : > { %s897_s15 = smov %s723_s18  ;;  %15 = sbr.rel (!%p13_p3) target bundleno = 3 (0x3), region = 70 }
 0x130   :  { %502 = vsyncpa [#allocation3], 1 }
 0x131   :  { %504 = vsyncpa [#allocation3 + $0x1], 1 }

</bundles_post_ra>
